<compile_context>
chip_gen: v5e
topology: v5e:2x2
jax: 0.10.0
libtpu: 0.0.40
codegen_flags: <defaults>
</compile_context>

<pallas_src>
import functools

import jax
import jax.numpy as jnp
from jax import lax
from jax.experimental import pallas as pl
from jax.experimental.pallas import tpu as pltpu


# --------------------------------------------------------------------------
# Kernels
# --------------------------------------------------------------------------
def _dson_single_pass_kernel(mix_ref, x_ref, gamma_ref, beta_ref, o_ref, *,
                             eps, hw_true):
    """One C-tile of the fused IN/BN forward (stats + normalize, x read once).

    mix_ref   : SMEM (4,) f32 = [mw_in, mw_bn, vw_in, vw_bn] (already softmaxed)
    x_ref     : VMEM (N, C_TILE, HW)
    gamma_ref : VMEM (C_TILE, 1)
    beta_ref  : VMEM (C_TILE, 1)
    o_ref     : VMEM (N, C_TILE, HW)
    """
    xf = x_ref[...].astype(jnp.float32)                  # (N, Ct, HW)

    # Per-(N, C) sum / sum-of-squares.
    s = jnp.sum(xf, axis=-1, keepdims=True)              # (N, Ct, 1)
    sq = jnp.sum(xf * xf, axis=-1, keepdims=True)        # (N, Ct, 1)

    inv_hw = jnp.float32(1.0 / hw_true)
    mean_in = s * inv_hw
    # Unbiased variance: (sumsq - hw*mean^2) / (hw - 1); hw*mean^2 == mean*s.
    inv_dof = jnp.float32(1.0 / max(hw_true - 1, 1))
    var_in = (sq - mean_in * s) * inv_dof

    # Batch statistics: reduce tiny per-instance stats over N.
    mean_bn = jnp.mean(mean_in, axis=0, keepdims=True)                       # (1,Ct,1)
    var_bn = (jnp.mean(var_in + mean_in * mean_in, axis=0, keepdims=True)
              - mean_bn * mean_bn)                                           # (1,Ct,1)

    mean = mix_ref[0] * mean_in + mix_ref[1] * mean_bn    # (N, Ct, 1)
    var = mix_ref[2] * var_in + mix_ref[3] * var_bn       # (N, Ct, 1)
    inv_std = lax.rsqrt(var + jnp.float32(eps))           # (N, Ct, 1)

    gamma = gamma_ref[...][None, :, :]                    # (1, Ct, 1)
    beta = beta_ref[...][None, :, :]                      # (1, Ct, 1)

    # Fold normalization + affine into a single per-(N,C) scale/shift FMA.
    scale = gamma * inv_std
    shift = beta - mean * scale
    o_ref[...] = (xf * scale + shift).astype(o_ref.dtype)


def _stats_kernel(x_ref, sum_ref, sq_ref, *, hw_true, hw_tile):
    """Two-pass fallback, pass 1: accumulate per-(N,C) sum / sumsq over HW tiles."""
    j = pl.program_id(1)

    @pl.when(j == 0)
    def _():
        sum_ref[...] = jnp.zeros_like(sum_ref)
        sq_ref[...] = jnp.zeros_like(sq_ref)

    xf = x_ref[...].astype(jnp.float32)                   # (N, Ct, HWt)
    if hw_true % hw_tile != 0:
        # The last HW block overhangs the array; zero the garbage tail so it
        # does not pollute the reductions.
        lane = lax.broadcasted_iota(jnp.int32, xf.shape, 2)
        xf = jnp.where(j * hw_tile + lane < hw_true, xf, jnp.float32(0.0))

    sum_ref[...] += jnp.sum(xf, axis=-1, keepdims=True)
    sq_ref[...] += jnp.sum(xf * xf, axis=-1, keepdims=True)


def _apply_kernel(x_ref, scale_ref, shift_ref, o_ref):
    """Two-pass fallback, pass 2: out = x * scale + shift (per-(N,C) scale/shift)."""
    xf = x_ref[...].astype(jnp.float32)
    o_ref[...] = (xf * scale_ref[...] + shift_ref[...]).astype(o_ref.dtype)


# --------------------------------------------------------------------------
# Sizing helpers
# --------------------------------------------------------------------------
def _vmem_config():
    """Generation-aware (per-step budget, scoped VMEM limit)."""
    cap = 64 * 1024 * 1024  # conservative default (v7x per-TC VMEM)
    try:
        info = pltpu.get_tpu_info()
        cap = int(getattr(info, "vmem_capacity_bytes", cap)) or cap
    except Exception:  # query unavailable: keep conservative default
        pass
    limit = min(int(cap * 0.55), 64 * 1024 * 1024)
    budget = 12 * 1024 * 1024 if cap <= 64 * 1024 * 1024 else 20 * 1024 * 1024
    budget = min(budget, limit // 2)
    return budget, limit


def _choose_c_tile(n, c, hw, budget_bytes):
    """C tile for the single-pass kernel, or None -> use the two-pass fallback."""
    bytes_per_channel = 6 * n * hw * 4      # ~6 concurrent f32-sized buffers/row
    max_rows = budget_bytes // bytes_per_channel
    if c <= 8:
        return c if max_rows >= c else None
    if max_rows < 8:
        return None
    max_rows8 = (max_rows // 8) * 8
    # Cap at ~C/2 (rounded up to a multiple of 8) so the "parallel" C axis has
    # at least 2 grid steps -> both v7x TensorCores do work.
    half8 = ((-(-c // 2)) + 7) // 8 * 8
    return max(8, min(max_rows8, half8))


def _choose_two_pass_tiles(n, c, hw, budget_bytes):
    c_tile = c if c <= 8 else 8
    if hw <= 128:
        return c_tile, hw
    per_lane_bytes = 4 * n * c_tile * 4
    max_ht = (budget_bytes // per_lane_bytes) // 128 * 128
    hw_ceil = -(-hw // 128) * 128
    hw_tile = max(128, min(max_ht, hw_ceil, 8192))
    return c_tile, hw_tile


# --------------------------------------------------------------------------
# Wrapper
# --------------------------------------------------------------------------
def optimized_norm2d_pallas(x, gamma, beta, mean_weight, var_weight, eps=1e-5,
                            force_two_pass=False, two_pass_tiles=None):
    """One OptimizedNorm2d branch (training-mode statistics).

    x            : (N, C, H, W)
    gamma, beta  : (C,)
    mean_weight  : (2,) raw logits (softmaxed here; parameter glue)
    var_weight   : (2,)
    """
    n, c, h, w = x.shape
    hw = h * w
    x3 = x.reshape(n, c, hw)

    mw = jax.nn.softmax(mean_weight.astype(jnp.float32))
    vw = jax.nn.softmax(var_weight.astype(jnp.float32))
    gamma2 = gamma.astype(jnp.float32).reshape(c, 1)
    beta2 = beta.astype(jnp.float32).reshape(c, 1)

    budget, vmem_limit = _vmem_config()
    c_tile = None if force_two_pass else _choose_c_tile(n, c, hw, budget)

    if c_tile is not None:
        # ------------------------- single pass -------------------------
        mix = jnp.concatenate([mw, vw]).astype(jnp.float32)   # (4,)
        grid = (pl.cdiv(c, c_tile),)
        itemsize = jnp.dtype(x.dtype).itemsize
        cost = pl.CostEstimate(
            flops=6 * n * c * hw,
            transcendentals=n * c,
            bytes_accessed=2 * n * c * hw * itemsize,
        )
        out3 = pl.pallas_call(
            functools.partial(_dson_single_pass_kernel, eps=eps, hw_true=hw),
            out_shape=jax.ShapeDtypeStruct((n, c, hw), x.dtype),
            grid=grid,
            in_specs=[
                pl.BlockSpec(memory_space=pltpu.MemorySpace.SMEM),       # mix
                pl.BlockSpec((n, c_tile, hw), lambda i: (0, i, 0)),      # x slab
                pl.BlockSpec((c_tile, 1), lambda i: (i, 0)),             # gamma
                pl.BlockSpec((c_tile, 1), lambda i: (i, 0)),             # beta
            ],
            out_specs=pl.BlockSpec((n, c_tile, hw), lambda i: (0, i, 0)),
            compiler_params=pltpu.CompilerParams(
                dimension_semantics=("parallel",),
                vmem_limit_bytes=vmem_limit,
            ),
            cost_estimate=cost,
        )(mix, x3, gamma2, beta2)
        return out3.reshape(n, c, h, w)

    # --------------------------- two-pass fallback ---------------------------
    if two_pass_tiles is not None:
        ct, ht = two_pass_tiles
    else:
        ct, ht = _choose_two_pass_tiles(n, c, hw, budget)
    grid2 = (pl.cdiv(c, ct), pl.cdiv(hw, ht))

    s, sq = pl.pallas_call(
        functools.partial(_stats_kernel, hw_true=hw, hw_tile=ht),
        out_shape=(jax.ShapeDtypeStruct((n, c, 1), jnp.float32),
                   jax.ShapeDtypeStruct((n, c, 1), jnp.float32)),
        grid=grid2,
        in_specs=[pl.BlockSpec((n, ct, ht), lambda i, j: (0, i, j))],
        out_specs=(pl.BlockSpec((n, ct, 1), lambda i, j: (0, i, 0)),
                   pl.BlockSpec((n, ct, 1), lambda i, j: (0, i, 0))),
        compiler_params=pltpu.CompilerParams(
            dimension_semantics=("parallel", "arbitrary"),
            vmem_limit_bytes=vmem_limit,
        ),
    )(x3)

    # Tiny (N, C, 1) stat algebra: negligible next to the x streams.
    mean_in = s * (1.0 / hw)
    var_in = (sq - mean_in * s) * (1.0 / max(hw - 1, 1))
    mean_bn = jnp.mean(mean_in, axis=0, keepdims=True)
    var_bn = jnp.mean(var_in + mean_in * mean_in, axis=0, keepdims=True) - mean_bn * mean_bn
    mean = mw[0] * mean_in + mw[1] * mean_bn
    var = vw[0] * var_in + vw[1] * var_bn
    inv_std = lax.rsqrt(var + jnp.float32(eps))
    scale = gamma2[None, :, :] * inv_std                  # (N, C, 1)
    shift = beta2[None, :, :] - mean * scale              # (N, C, 1)

    out3 = pl.pallas_call(
        _apply_kernel,
        out_shape=jax.ShapeDtypeStruct((n, c, hw), x.dtype),
        grid=grid2,
        in_specs=[
            pl.BlockSpec((n, ct, ht), lambda i, j: (0, i, j)),
            pl.BlockSpec((n, ct, 1), lambda i, j: (0, i, 0)),
            pl.BlockSpec((n, ct, 1), lambda i, j: (0, i, 0)),
        ],
        out_specs=pl.BlockSpec((n, ct, ht), lambda i, j: (0, i, j)),
        compiler_params=pltpu.CompilerParams(
            dimension_semantics=("parallel", "parallel"),
            vmem_limit_bytes=vmem_limit,
        ),
    )(x3, scale, shift)
    return out3.reshape(n, c, h, w)


# --------------------------------------------------------------------------
# Module-level wrapper (mirrors the PyTorch class)
# --------------------------------------------------------------------------
class DomainSpecificOptimizedNorm2dPallas:
    """JAX/Pallas port of DomainSpecificOptimizedNorm2d (forward only)."""

    def __init__(self, num_features, num_domains, eps=1e-5, key=None):
        self.num_features = num_features
        self.num_domains = num_domains
        self.eps = eps
        # Module defaults: weight=1, bias=0, mean_weight=ones(2), var_weight=ones(2).
        # Small deterministic perturbations so the affine/mixing paths are exercised.
        if key is None:
            key = jax.random.PRNGKey(0)
        kg, kb, km, kv = jax.random.split(key, 4)
        d, c = num_domains, num_features
        self.gamma = 1.0 + 0.1 * jax.random.normal(kg, (d, c), dtype=jnp.float32)
        self.beta = 0.1 * jax.random.normal(kb, (d, c), dtype=jnp.float32)
        self.mean_weight = 1.0 + 0.5 * jax.random.normal(km, (d, 2), dtype=jnp.float32)
        self.var_weight = 1.0 + 0.5 * jax.random.normal(kv, (d, 2), dtype=jnp.float32)

    def __call__(self, x, domain_label):
        # domain_label indexes a ModuleList in PyTorch -> static Python int here.
        if x.ndim != 4:
            raise ValueError(f"expected 4D input (got {x.ndim}D input)")
        d = int(domain_label)
        out = optimized_norm2d_pallas(
            x,
            self.gamma[d],
            self.beta[d],
            self.mean_weight[d],
            self.var_weight[d],
            eps=self.eps,
        )
        return out, domain_label


# --------------------------------------------------------------------------
# Reference + self-test
# --------------------------------------------------------------------------
def _reference_forward(x, gamma, beta, mean_weight, var_weight, eps=1e-5):
    """Pure-JAX reference mirroring the PyTorch OptimizedNorm2d (training mode)."""
    n, c, h, w = x.shape
    xr = x.reshape(n, c, -1).astype(jnp.float32)
    mean_in = xr.mean(-1, keepdims=True)
    var_in = xr.var(-1, keepdims=True, ddof=1)
    mean_bn = mean_in.mean(0, keepdims=True)
    var_bn = (var_in + mean_in ** 2).mean(0, keepdims=True) - mean_bn ** 2
    mw = jax.nn.softmax(mean_weight)
    vw = jax.nn.softmax(var_weight)
    mean = mw[0] * mean_in + mw[1] * mean_bn
    var = vw[0] * var_in + vw[1] * var_bn
    xn = (xr - mean) / jnp.sqrt(var + eps)
    xn = xn.reshape(n, c, h, w)
    return xn * gamma.reshape(1, c, 1, 1) + beta.reshape(1, c, 1, 1)


if __name__ == "__main__":
    key = jax.random.PRNGKey(0)
    kx, kx2, kp = jax.random.split(key, 3)

    # ---- Test 1: module-level forward, main single-pass path ----
    N, C, H, W = 2, 4, 16, 16
    num_domains = 3
    x = jax.random.normal(kx, (N, C, H, W), dtype=jnp.float32) * 2.0 + 0.5

    dson = DomainSpecificOptimizedNorm2dPallas(
        num_features=C, num_domains=num_domains, eps=1e-5, key=kp
    )
    domain_label = 1
    out, dom = dson(x, domain_label)
    out = jax.block_until_ready(out)
    ref = _reference_forward(
        x, dson.gamma[domain_label], dson.beta[domain_label],
        dson.mean_weight[domain_label], dson.var_weight[domain_label], eps=dson.eps,
    )
    assert out.shape == (N, C, H, W)
    assert dom == domain_label
    assert jnp.allclose(out, ref, rtol=1e-3, atol=1e-3), "mismatch (single-pass, 16x16)"

    # ---- Test 2: H*W not a multiple of 128 (14x14), C split across 2 blocks ----
    N2, C2, H2, W2 = 2, 16, 14, 14
    x2 = jax.random.normal(kx2, (N2, C2, H2, W2), dtype=jnp.float32) - 0.25
    g2 = 1.0 + 0.05 * jnp.arange(C2, dtype=jnp.float32)
    b2 = 0.02 * jnp.arange(C2, dtype=jnp.float32)
    mw2 = jnp.array([0.7, 1.3], dtype=jnp.float32)
    vw2 = jnp.array([1.1, 0.4], dtype=jnp.float32)
    out2 = jax.block_until_ready(optimized_norm2d_pallas(x2, g2, b2, mw2, vw2))
    ref2 = _reference_forward(x2, g2, b2, mw2, vw2)
    assert jnp.allclose(out2, ref2, rtol=1e-3, atol=1e-3), "mismatch (single-pass, 14x14)"

    # ---- Test 3: forced two-pass fallback with multiple HW blocks + partial tail ----
    out3 = jax.block_until_ready(
        optimized_norm2d_pallas(x2, g2, b2, mw2, vw2,
                                force_two_pass=True, two_pass_tiles=(8, 128)))
    assert jnp.allclose(out3, ref2, rtol=1e-3, atol=1e-3), "mismatch (two-pass fallback)"

    print("KERNEL_OK")
</pallas_src>

<mosaic_0001>
module attributes {stable_mosaic.version = 11 : i64} {
  func.func @_dson_single_pass_kernel(%arg0: i32, %arg1: memref<4xf32, #tpu.memory_space<smem>>, %arg2: memref<2x4x256xf32, #tpu.memory_space<vmem>>, %arg3: memref<4x1xf32, #tpu.memory_space<vmem>>, %arg4: memref<4x1xf32, #tpu.memory_space<vmem>>, %arg5: memref<2x4x256xf32, #tpu.memory_space<vmem>>) attributes {dimension_semantics = [#tpu.dimension_semantics<parallel>], iteration_bounds = array<i64: 1>, scalar_prefetch = 0 : i64, scratch_operands = 0 : i64, tpu.core_type = #tpu.core_type<tc>, window_params = [{transform_indices = @transform_0, window_bounds = array<i64: 4>}, {transform_indices = @transform_1, window_bounds = array<i64: 2, 4, 256>}, {transform_indices = @transform_2, window_bounds = array<i64: 4, 1>}, {transform_indices = @transform_3, window_bounds = array<i64: 4, 1>}, {transform_indices = @transform_4, window_bounds = array<i64: 2, 4, 256>}]} {
    %c0 = arith.constant 0 : index
    %c0_0 = arith.constant 0 : index
    %c0_1 = arith.constant 0 : index
    %0 = vector.load %arg2[%c0, %c0_0, %c0_1] : memref<2x4x256xf32, #tpu.memory_space<vmem>>, vector<2x4x256xf32>
    %cst = arith.constant dense<0.000000e+00> : vector<2x4xf32>
    %1 = vector.multi_reduction <add>, %0, %cst [2] : vector<2x4x256xf32> to vector<2x4xf32>
    %2 = vector.shape_cast %1 : vector<2x4xf32> to vector<2x4x1xf32>
    %3 = arith.mulf %0, %0 : vector<2x4x256xf32>
    %cst_2 = arith.constant dense<0.000000e+00> : vector<2x4xf32>
    %4 = vector.multi_reduction <add>, %3, %cst_2 [2] : vector<2x4x256xf32> to vector<2x4xf32>
    %5 = vector.shape_cast %4 : vector<2x4xf32> to vector<2x4x1xf32>
    %cst_3 = arith.constant 3.906250e-03 : f32
    %6 = vector.broadcast %cst_3 : f32 to vector<2x4x1xf32>
    %7 = arith.mulf %2, %6 : vector<2x4x1xf32>
    %8 = arith.mulf %7, %2 : vector<2x4x1xf32>
    %9 = arith.subf %5, %8 : vector<2x4x1xf32>
    %cst_4 = arith.constant 0.00392156886 : f32
    %10 = vector.broadcast %cst_4 : f32 to vector<2x4x1xf32>
    %11 = arith.mulf %9, %10 : vector<2x4x1xf32>
    %cst_5 = arith.constant dense<0.000000e+00> : vector<4x1xf32>
    %12 = vector.multi_reduction <add>, %7, %cst_5 [0] : vector<2x4x1xf32> to vector<4x1xf32>
    %13 = vector.shape_cast %12 : vector<4x1xf32> to vector<1x4x1xf32>
    %cst_6 = arith.constant 2.000000e+00 : f32
    %14 = vector.broadcast %cst_6 : f32 to vector<1x4x1xf32>
    %15 = arith.divf %13, %14 : vector<1x4x1xf32>
    %16 = arith.mulf %7, %7 : vector<2x4x1xf32>
    %17 = arith.addf %11, %16 : vector<2x4x1xf32>
    %cst_7 = arith.constant dense<0.000000e+00> : vector<4x1xf32>
    %18 = vector.multi_reduction <add>, %17, %cst_7 [0] : vector<2x4x1xf32> to vector<4x1xf32>
    %19 = vector.shape_cast %18 : vector<4x1xf32> to vector<1x4x1xf32>
    %cst_8 = arith.constant 2.000000e+00 : f32
    %20 = vector.broadcast %cst_8 : f32 to vector<1x4x1xf32>
    %21 = arith.divf %19, %20 : vector<1x4x1xf32>
    %22 = arith.mulf %15, %15 : vector<1x4x1xf32>
    %23 = arith.subf %21, %22 : vector<1x4x1xf32>
    %c0_9 = arith.constant 0 : index
    %24 = memref.load %arg1[%c0_9] : memref<4xf32, #tpu.memory_space<smem>>
    %25 = vector.broadcast %24 : f32 to vector<2x4x1xf32>
    %26 = arith.mulf %25, %7 : vector<2x4x1xf32>
    %c1 = arith.constant 1 : index
    %27 = memref.load %arg1[%c1] : memref<4xf32, #tpu.memory_space<smem>>
    %28 = vector.broadcast %27 : f32 to vector<1x4x1xf32>
    %29 = arith.mulf %28, %15 : vector<1x4x1xf32>
    %30 = vector.broadcast %29 : vector<1x4x1xf32> to vector<2x4x1xf32>
    %31 = arith.addf %26, %30 : vector<2x4x1xf32>
    %c2 = arith.constant 2 : index
    %32 = memref.load %arg1[%c2] : memref<4xf32, #tpu.memory_space<smem>>
    %33 = vector.broadcast %32 : f32 to vector<2x4x1xf32>
    %34 = arith.mulf %33, %11 : vector<2x4x1xf32>
    %c3 = arith.constant 3 : index
    %35 = memref.load %arg1[%c3] : memref<4xf32, #tpu.memory_space<smem>>
    %36 = vector.broadcast %35 : f32 to vector<1x4x1xf32>
    %37 = arith.mulf %36, %23 : vector<1x4x1xf32>
    %38 = vector.broadcast %37 : vector<1x4x1xf32> to vector<2x4x1xf32>
    %39 = arith.addf %34, %38 : vector<2x4x1xf32>
    %cst_10 = arith.constant 9.99999974E-6 : f32
    %40 = vector.broadcast %cst_10 : f32 to vector<2x4x1xf32>
    %41 = arith.addf %39, %40 : vector<2x4x1xf32>
    %42 = math.rsqrt %41 : vector<2x4x1xf32>
    %c0_11 = arith.constant 0 : index
    %c0_12 = arith.constant 0 : index
    %43 = vector.load %arg3[%c0_11, %c0_12] : memref<4x1xf32, #tpu.memory_space<vmem>>, vector<4x1xf32>
    %44 = vector.shape_cast %43 : vector<4x1xf32> to vector<1x4x1xf32>
    %c0_13 = arith.constant 0 : index
    %c0_14 = arith.constant 0 : index
    %45 = vector.load %arg4[%c0_13, %c0_14] : memref<4x1xf32, #tpu.memory_space<vmem>>, vector<4x1xf32>
    %46 = vector.shape_cast %45 : vector<4x1xf32> to vector<1x4x1xf32>
    %47 = vector.broadcast %44 : vector<1x4x1xf32> to vector<2x4x1xf32>
    %48 = arith.mulf %47, %42 : vector<2x4x1xf32>
    %49 = arith.mulf %31, %48 : vector<2x4x1xf32>
    %50 = vector.broadcast %46 : vector<1x4x1xf32> to vector<2x4x1xf32>
    %51 = arith.subf %50, %49 : vector<2x4x1xf32>
    %52 = vector.broadcast %48 : vector<2x4x1xf32> to vector<2x4x256xf32>
    %53 = arith.mulf %0, %52 : vector<2x4x256xf32>
    %54 = vector.broadcast %51 : vector<2x4x1xf32> to vector<2x4x256xf32>
    %55 = arith.addf %53, %54 : vector<2x4x256xf32>
    %c0_15 = arith.constant 0 : index
    %c0_16 = arith.constant 0 : index
    %c0_17 = arith.constant 0 : index
    %56 = vector.load %arg5[%c0_15, %c0_16, %c0_17] : memref<2x4x256xf32, #tpu.memory_space<vmem>>, vector<2x4x256xf32>
    tpu.vector_store %arg5[%c0_15, %c0_16, %c0_17], %55 {strides = array<i32>} : memref<2x4x256xf32, #tpu.memory_space<vmem>>, vector<2x4x256xf32>,
    return
  }
  func.func @transform_0(%arg0: i32) -> i32 {
    %c0_i32 = arith.constant 0 : i32
    %c0_i32_0 = arith.constant 0 : i32
    return %c0_i32 : i32
  }
  func.func @transform_1(%arg0: i32) -> (i32, i32, i32) {
    %c0_i32 = arith.constant 0 : i32
    %c0_i32_0 = arith.constant 0 : i32
    %c0_i32_1 = arith.constant 0 : i32
    return %c0_i32, %arg0, %c0_i32_0 : i32, i32, i32
  }
  func.func @transform_2(%arg0: i32) -> (i32, i32) {
    %c0_i32 = arith.constant 0 : i32
    %c0_i32_0 = arith.constant 0 : i32
    return %arg0, %c0_i32 : i32, i32
  }
  func.func @transform_3(%arg0: i32) -> (i32, i32) {
    %c0_i32 = arith.constant 0 : i32
    %c0_i32_0 = arith.constant 0 : i32
    return %arg0, %c0_i32 : i32, i32
  }
  func.func @transform_4(%arg0: i32) -> (i32, i32, i32) {
    %c0_i32 = arith.constant 0 : i32
    %c0_i32_0 = arith.constant 0 : i32
    %c0_i32_1 = arith.constant 0 : i32
    return %c0_i32, %arg0, %c0_i32_0 : i32, i32, i32
  }
}

</mosaic_0001>

<bundles_post_ra>
// kernel: tpu_custom_call.1
= control target key start
LH: loop header
LB: loop body
LE: loop exit
PB: predicated region body
PF: predicated region fallthrough
CT: control target
= control target key end

     0   :  { %9 = vsyncpa [#allocation5], 0  ;;  %s408_s0 = inlined_call_operand.vmem [shape: f32[4], index: 0, kind: input, shape index: {}]   ;;  %s409_s1 = inlined_call_operand.hbm [shape: f32[2,4,256], index: 1, kind: input, shape index: {}]   ;;  %s410_s2 = inlined_call_operand.vmem [shape: f32[4,1], index: 2, kind: input, shape index: {}]   ;;  %s411_s3 = inlined_call_operand.vmem [shape: f32[4,1], index: 3, kind: input, shape index: {}]   ;;  %s412_s4 = inlined_call_operand.hbm [shape: f32[2,4,256], index: 4, kind: output, shape index: {}]  }
   0x1   :  { %10 = vsyncpa [#allocation3], 0 }
   0x2   :  { %11 = vsyncpa [#allocation4], 0  ;;  %s17_s17 = sshll.u32 %s408_s0, 4  ;;  %s25_s20 = sshll.u32 %s409_s1, 4  ;;  %s18_s17 = int_to_ptr.vmem [resolvable:$true] %s17_s17  ;;  %s26_s20 = int_to_ptr.hbm [resolvable:$true] %s25_s20 }
   0x3   :  { %s323_s21 = smov [#allocation2]   ;;  %s324_s22 = smov [#allocation6]  }
   0x4   :  { %20 = dma.vmem_to_smem %s18_s17, 16, %s323_s21, [#allocation5]  }
   0x5   :  { %s27_s23 = sshll.u32 %s324_s22, 4  ;;  %s325_s24 = smov 128   ;;  %s28_s23 = int_to_ptr.vmem [resolvable:$true] %s27_s23 }
   0x6   :  { %s326_s25 = smov 8  }
   0x7   :  { %33 = dma.hbm_to_vmem [thread:$0]  %s26_s20, 256, %s28_s23, [#allocation3], %s325_s24, %s325_s24, %s326_s25  }
   0x8   :  { %317 = dma.done.wait [#allocation5], 16  }
   0x9   :  { %318 = vsyncadd [#allocation5], 4294967280 }
   0xa   :  { %319 = dma.done.wait [#allocation3], 256  }
   0xb   :  { %320 = vsyncadd [#allocation3], 4294967040 }
   0xc   :  { %46 = sfence }
   0xd   :  { %v365_v0 = vld [vmem:[#allocation6] sm:$0xff]  ;;  %v367_v1 = vld [vmem:[#allocation6 + $0x8] sm:$0xff]  ;;  %vm62_vm0 = vcmask 1043456   ;;  %v327_v24 = vmov 2.0   ;;  %v328_v36 = vmov 0   ;;  %s238_s0 = sld [smem:[#allocation2 + $0x2]] }
   0xe   :  { %51 = vst [vmem:[#allocation1] ss:$2 sm:$0xff] %v365_v0  ;;  %v73_v2 = vmul.f32 %v365_v0, %v365_v0  ;;  %v74_v3 = vmul.f32 %v367_v1, %v367_v1  ;;  %251 = vrcp.f32 %v327_v24  ;;  %248 = vset.pattern.permute.xlu2 %v328_v36  ;;  %250 = vset.pattern.permute.xlu1 %v328_v36  ;;  %s239_s1 = sld [smem:[#allocation2 + $0x3]]  ;;  %s223_s8 = sshll.u32 %s412_s4, 4  ;;  %s224_s8 = int_to_ptr.hbm [resolvable:$true] %s223_s8 }
   0xf   :  { %55 = vst [vmem:[#allocation1 + $0x10] ss:$2 sm:$0xff] %v367_v1  ;;  %249 = vset.pattern.permute.xlu0 %v328_v36  ;;  %s237_s26 = sld [smem:[#allocation2 + $0x1]] }
  0x10   :  { %s127_s27 = sld [smem:[#allocation2]] }
  0x13   :  { %v137_v57 = vstv %s238_s0 }
  0x14   :  { %v252_v25 = vpop.eup %251  ;;  %v141_v58 = vstv %s239_s1 }
  0x15   :  { %v52_v4 = vld.sshfl [vmem:[#allocation1] sm:$0xff pattern:$0x75316420]  ;;  %v53_v5 = vld.sshfl [vmem:[#allocation1 + $0x8] sm:$0xff pattern:$0x75316420]  ;;  %vm114_vm1 = vweird.f32 %v252_v25 }
  0x16   :  { %v63_v6 = vsel %vm62_vm0, %v52_v4, 0.0  ;;  %v64_v7 = vsel %vm62_vm0, %v53_v5, 0.0  ;;  %77 = vst [vmem:[#allocation1] ss:$2 sm:$0xff] %v73_v2  ;;  %v110_v27 = vmul.f32 2.0, %v252_v25 }
  0x17   :  { %v65_v8 = vadd.f32 %v64_v7, %v63_v6  ;;  %v56_v9 = vld.sshfl [vmem:[#allocation1 + $0x10] sm:$0xff pattern:$0x75316420]  ;;  %v57_v10 = vld.sshfl [vmem:[#allocation1 + $0x18] sm:$0xff pattern:$0x75316420] }
  0x18   :  { %81 = vst [vmem:[#allocation1 + $0x10] ss:$2 sm:$0xff] %v74_v3  ;;  %v68_v11 = vsel %vm62_vm0, %v56_v9, 0.0  ;;  %v69_v12 = vsel %vm62_vm0, %v57_v10, 0.0  ;;  %v111_v29 = vsub.f32 1.0, %v110_v27 }
  0x19   :  { %66 = vadd.xlane.f32.xlu0 %v65_v8  ;;  %v70_v15 = vadd.f32 %v69_v12, %v68_v11  ;;  %v132_v11 = vstv %s237_s26 }
  0x1a   :  { %v112_v35 = vmul.f32 %v252_v25, %v111_v29 }
  0x1c   :  { %v113_v40 = vadd.f32 %v252_v25, %v112_v35  ;;  %v329_v35 = vmov 839922192  }
  0x1d   :  { %v78_v13 = vld.sshfl [vmem:[#allocation1] sm:$0xff pattern:$0x75316420]  ;;  %v79_v14 = vld.sshfl [vmem:[#allocation1 + $0x8] sm:$0xff pattern:$0x75316420]  ;;  %v184_v36 = vunpack.c.l.s4 %v329_v35 }
  0x1e   :  { %v88_v16 = vsel %vm62_vm0, %v78_v13, 0.0  ;;  %v89_v17 = vsel %vm62_vm0, %v79_v14, 0.0  ;;  %v115_v47 = vsel %vm114_vm1, %v252_v25, %v113_v40  ;;  %v128_v14 = vstv %s127_s27 }
  0x1f   :  { %v90_v18 = vadd.f32 %v89_v17, %v88_v16  ;;  %v82_v19 = vld.sshfl [vmem:[#allocation1 + $0x10] sm:$0xff pattern:$0x75316420]  ;;  %v83_v20 = vld.sshfl [vmem:[#allocation1 + $0x18] sm:$0xff pattern:$0x75316420] }
  0x20   :  { %v93_v21 = vsel %vm62_vm0, %v82_v19, 0.0  ;;  %v94_v22 = vsel %vm62_vm0, %v83_v20, 0.0  ;;  %v167_v20 = vld [vmem:[%s410_s2] sm:$0xf]  ;;  %s330_s2 = smov [#allocation7]  }
  0x21   :  { %91 = vadd.xlane.f32.xlu1 %v90_v18  ;;  %71 = vadd.xlane.f32.xlu0 %v70_v15  ;;  %v95_v23 = vadd.f32 %v94_v22, %v93_v21 }
  0x29   :  { %96 = vadd.xlane.f32.xlu1 %v95_v23 }
  0x8c   :  { %v67_v26 = vpop.xlane.xlu0 %66 }
  0x8d   :  { %v383_v28 = vmul.f32 0.00390625, %v67_v26 }
  0x8f   :  { %v100_v32 = vmul.f32 %v383_v28, %v67_v26  ;;  %v106_v42 = vsel %vm62_vm0, %v383_v28, 0.0  ;;  %v117_v43 = vmul.f32 %v383_v28, %v383_v28  ;;  %v129_v21 = vmul.f32 %v128_v14, %v383_v28 }
  0x94   :  { %v92_v30 = vpop.xlane.xlu1 %91  ;;  %v72_v31 = vpop.xlane.xlu0 %71 }
  0x95   :  { %v102_v33 = vsub.f32 %v92_v30, %v100_v32  ;;  %v99_v34 = vmul.f32 0.00390625, %v72_v31  ;;  %v168_v30 = vld [vmem:[%s411_s3] sm:$0xf]  ;;  %s221_s3 = sshll.u32 %s330_s2, 4  ;;  %s222_s3 = int_to_ptr.vmem [resolvable:$true] %s221_s3 }
  0x97   :  { %v104_v37 = vmul.f32 0.003921569, %v102_v33  ;;  %v101_v38 = vmul.f32 %v99_v34, %v72_v31  ;;  %v107_v39 = vsel %vm62_vm0, %v99_v34, 0.0  ;;  %v118_v49 = vmul.f32 %v99_v34, %v99_v34 }
  0x98   :  { %v108_v45 = vadd.f32 %v107_v39, %v106_v42  ;;  %v130_v18 = vmul.f32 %v128_v14, %v99_v34 }
  0x99   :  { %v119_v46 = vadd.f32 %v117_v43, %v104_v37  ;;  %v138_v60 = vmul.f32 %v137_v57, %v104_v37  ;;  %v185_v37 = vunpack.c.0.s8 %v184_v36 }
  0x9a   :  { %v116_v51 = vmul.f32 %v115_v47, %v108_v45 }
  0x9b   :  { %v121_v52 = vsel %vm62_vm0, %v119_v46, 0.0 }
  0x9c   :  { %v97_v41 = vpop.xlane.xlu1 %96  ;;  %v125_v56 = vmul.f32 %v116_v51, %v116_v51  ;;  %v133_v16 = vmul.f32 %v132_v11, %v116_v51 }
  0x9d   :  { %v103_v44 = vsub.f32 %v97_v41, %v101_v38 }
  0x9e   :  { %v134_v24 = vadd.f32 %v133_v16, %v129_v21  ;;  %v135_v27 = vadd.f32 %v133_v16, %v130_v18 }
  0x9f   :  { %v105_v48 = vmul.f32 0.003921569, %v103_v44 }
  0xa1   :  { %v120_v50 = vadd.f32 %v118_v49, %v105_v48  ;;  %v139_v61 = vmul.f32 %v137_v57, %v105_v48 }
  0xa3   :  { %v122_v53 = vsel %vm62_vm0, %v120_v50, 0.0 }
  0xa4   :  { %v123_v54 = vadd.f32 %v122_v53, %v121_v52 }
  0xa6   :  { %v124_v55 = vmul.f32 %v123_v54, %v115_v47 }
  0xa8   :  { %v126_v59 = vsub.f32 %v124_v55, %v125_v56 }
  0xaa   :  { %v142_v62 = vmul.f32 %v141_v58, %v126_v59 }
  0xac   :  { %v143_v63 = vadd.f32 %v142_v62, %v138_v60  ;;  %v144_v2 = vadd.f32 %v142_v62, %v139_v61 }
  0xae   :  { %v145_v3 = vadd.f32 1e-05, %v143_v63  ;;  %v146_v4 = vadd.f32 1e-05, %v144_v2 }
  0xb0   :  { %253 = vrsqrt.f32 %v145_v3  ;;  %vm153_vm4 = vweird.f32 %v145_v3  ;;  %vm163_vm6 = vweird.f32 %v146_v4 }
  0xb1   :  { %255 = vrsqrt.f32 %v146_v4 }
  0xb6   :  { %v254_v5 = vpop.eup %253 }
  0xb7   :  { %v256_v6 = vpop.eup %255  ;;  %v148_v7 = vmul.f32 %v254_v5, %v145_v3  ;;  %vm154_vm2 = vweird.f32 %v254_v5 }
  0xb8   :  { %v158_v8 = vmul.f32 %v256_v6, %v146_v4  ;;  %vm164_vm3 = vweird.f32 %v256_v6  ;;  %vm155_vm5 = vmor %vm153_vm4, %vm154_vm2 }
  0xb9   :  { %v149_v9 = vmul.f32 %v254_v5, %v148_v7  ;;  %vm165_vm7 = vmor %vm163_vm6, %vm164_vm3 }
  0xba   :  { %v159_v10 = vmul.f32 %v256_v6, %v158_v8 }
  0xbb   :  { %v150_v12 = vmul.f32 0.5, %v149_v9 }
  0xbc   :  { %v160_v13 = vmul.f32 0.5, %v159_v10 }
  0xbd   :  { %v151_v15 = vsub.f32 1.5, %v150_v12 }
  0xbe   :  { %v161_v17 = vsub.f32 1.5, %v160_v13 }
  0xbf   :  { %v152_v19 = vmul.f32 %v254_v5, %v151_v15 }
  0xc0   :  { %v162_v22 = vmul.f32 %v256_v6, %v161_v17 }
  0xc1   :  { %v156_v23 = vsel %vm155_vm5, %v254_v5, %v152_v19 }
  0xc2   :  { %v166_v25 = vsel %vm165_vm7, %v256_v6, %v162_v22  ;;  %v169_v26 = vmul.f32 %v167_v20, %v156_v23 }
  0xc3   :  { %v170_v29 = vmul.f32 %v167_v20, %v166_v25 }
  0xc4   :  { %177 = vperm.xlu2 %248, %v169_v26   ;;  %v171_v31 = vmul.f32 %v169_v26, %v134_v24 }
  0xc5   :  { %v172_v32 = vmul.f32 %v170_v29, %v135_v27 }
  0xc6   :  { %v173_v33 = vsub.f32 %v168_v30, %v171_v31 }
  0xc7   :  { %v174_v34 = vsub.f32 %v168_v30, %v172_v32 }
  0xc8   :  { %197 = vperm.xlu0 %249, %v173_v33  }
  0xc9   :  { %201 = vperm.xlu1 %250, %v174_v34  }
  0xcc   :  { %181 = vperm.xlu2 %248, %v170_v29  }
 0x11e   :  { %v178_v28 = vpop.permute.xlu2 %177 }
 0x11f   :  { %v186_v39 = vperm.slane %v178_v28, %v185_v37 }
 0x121   :  { %v193_v42 = vmul.f32 %v186_v39, %v365_v0 }
 0x126   :  { %v182_v38 = vpop.permute.xlu2 %181 }
 0x127   :  { %v190_v40 = vperm.slane %v182_v38, %v185_v37 }
 0x129   :  { %v194_v45 = vmul.f32 %v190_v40, %v367_v1 }
 0x13a   :  { %v198_v41 = vpop.permute.xlu0 %197 }
 0x13b   :  { %v202_v43 = vpop.permute.xlu1 %201  ;;  %v206_v44 = vperm.slane %v198_v41, %v185_v37 }
 0x13c   :  { %v210_v46 = vperm.slane %v202_v43, %v185_v37 }
 0x13d   :  { %v213_v47 = vadd.f32 %v206_v44, %v193_v42 }
 0x13e   :  { %v214_v48 = vadd.f32 %v210_v46, %v194_v45 }
 0x13f   :  { %215 = vst [vmem:[#allocation7] sm:$0xff] %v213_v47 }
 0x140   :  { %216 = vst [vmem:[#allocation7 + $0x8] sm:$0xff] %v214_v48 }
 0x141   :  { %229 = dma.vmem_to_hbm [thread:$0]  %s222_s3, 256, %s224_s8, [#allocation4], %s325_s24, %s325_s24, %s326_s25  }
 0x142   :  { %321 = dma.done.wait [#allocation4], 256  }
 0x143   :  { %322 = vsyncadd [#allocation4], 4294967040 }
 0x144   :  { %234 = vsyncpa [#allocation3], 1 }
 0x145   :  { %235 = vsyncpa [#allocation4], 1 }
 0x146   :  { %236 = vsyncpa [#allocation5], 1 }

</bundles_post_ra>
